<compile_context>
chip_gen: v6e
topology: v6e:2x2x1
jax: 0.10.0
libtpu: 0.0.40
codegen_flags: <defaults>
</compile_context>

<pallas_src>
import functools

import jax
import jax.numpy as jnp
from jax.experimental import pallas as pl
from jax.experimental.pallas import tpu as pltpu


# ---------------------------------------------------------------------------
# Fused kernel: pass 0 = global min/max, pass 1 = normalized per-sample SSE
# and per-D PSNR epilogue.  Grid = (D, 2, T).
# ---------------------------------------------------------------------------
def _psnr_kernel(x1_ref, x2_ref, out_ref, stats_ref, sse_ref, *,
                 valid_p, tile_p, needs_mask):
    pass_idx = pl.program_id(1)
    t = pl.program_id(2)
    n_t = pl.num_programs(2)
    eps = jnp.float32(1e-8)

    # Tiles arrive in native dtype; cast to f32 in-register (keeps DMA narrow).
    x1 = x1_ref[0].astype(jnp.float32)          # (B, tile_p)
    x2 = x2_ref[0].astype(jnp.float32)

    if needs_mask:
        lane = jax.lax.broadcasted_iota(jnp.int32, x1.shape, dimension=1)
        mask = (t * tile_p + lane) < valid_p
    else:
        mask = None

    # ---- pass 0: global min / max of both images for this D-slice -----------
    @pl.when(pass_idx == 0)
    def _():
        @pl.when(t == 0)
        def _():
            stats_ref[0] = jnp.float32(jnp.inf)
            stats_ref[1] = jnp.float32(-jnp.inf)
            stats_ref[2] = jnp.float32(jnp.inf)
            stats_ref[3] = jnp.float32(-jnp.inf)

        if needs_mask:
            x1_lo = jnp.where(mask, x1, jnp.inf)
            x1_hi = jnp.where(mask, x1, -jnp.inf)
            x2_lo = jnp.where(mask, x2, jnp.inf)
            x2_hi = jnp.where(mask, x2, -jnp.inf)
        else:
            x1_lo = x1_hi = x1
            x2_lo = x2_hi = x2

        stats_ref[0] = jnp.minimum(stats_ref[0], jnp.min(x1_lo))
        stats_ref[1] = jnp.maximum(stats_ref[1], jnp.max(x1_hi))
        stats_ref[2] = jnp.minimum(stats_ref[2], jnp.min(x2_lo))
        stats_ref[3] = jnp.maximum(stats_ref[3], jnp.max(x2_hi))

    # ---- pass 1: normalized per-sample SSE + PSNR epilogue -------------------
    @pl.when(pass_idx == 1)
    def _():
        @pl.when(t == 0)
        def _():
            sse_ref[...] = jnp.zeros_like(sse_ref)

        min1 = stats_ref[0]
        max1 = stats_ref[1]
        min2 = stats_ref[2]
        max2 = stats_ref[3]
        inv1 = 1.0 / (max1 - min1 + eps)
        inv2 = 1.0 / (max2 - min2 + eps)

        diff = (x1 - min1) * inv1 - (x2 - min2) * inv2
        if needs_mask:
            diff = jnp.where(mask, diff, jnp.float32(0.0))
        sse_ref[...] += jnp.sum(diff * diff, axis=-1, keepdims=True)   # (B, 1)

        @pl.when(t == n_t - 1)
        def _():
            mse = sse_ref[...] * jnp.float32(1.0 / valid_p)            # (B, 1)
            # PIQA: 10 * log10(value_range**2 / (mse + eps)) = -10*log10(mse+eps)
            psnr_b = jnp.float32(-10.0) * jnp.log10(mse + eps)         # (B, 1)
            batch_mean = jnp.sum(psnr_b, axis=0, keepdims=True) * \
                jnp.float32(1.0 / psnr_b.shape[0])                     # (1, 1)
            out_ref[0] = batch_mean


# ---------------------------------------------------------------------------
# Wrapper over (D, B, P) slabs
# ---------------------------------------------------------------------------
def _psnr_slabs(x1, x2, tile_p=None):
    """x1, x2: (D, B, P), any float dtype.  Returns scalar PSNR (dB)."""
    D, B, P = x1.shape
    itemsize = x1.dtype.itemsize

    if tile_p is None:
        if B * P * itemsize <= (6 << 20):
            # Whole slab as one block: identical block index for pass 0 / pass 1
            # lets the pipeline elide the second fetch (single HBM read).
            tile_p = P
        else:
            target = 2 << 20                            # ~2 MiB per input block
            tile_p = max(128, (target // (B * itemsize)) // 128 * 128)

    if tile_p >= P:
        tile_p = P
        num_tiles = 1
    else:
        num_tiles = pl.cdiv(P, tile_p)
    needs_mask = (num_tiles * tile_p != P)

    kernel = functools.partial(
        _psnr_kernel,
        valid_p=P,
        tile_p=tile_p,
        needs_mask=needs_mask,
    )

    in_spec = pl.BlockSpec((1, B, tile_p), lambda d, p, t: (d, 0, t))

    out = pl.pallas_call(
        kernel,
        out_shape=jax.ShapeDtypeStruct((D, 1, 1), jnp.float32),
        grid_spec=pltpu.PrefetchScalarGridSpec(
            num_scalar_prefetch=0,
            grid=(D, 2, num_tiles),
            in_specs=[in_spec, in_spec],
            out_specs=pl.BlockSpec((1, 1, 1), lambda d, p, t: (d, 0, 0)),
            scratch_shapes=[
                pltpu.SMEM((4,), jnp.float32),          # min1, max1, min2, max2
                pltpu.VMEM((B, 1), jnp.float32),        # per-sample SSE
            ],
        ),
        compiler_params=pltpu.CompilerParams(
            # D-slices are fully independent (per-D output + per-D scratch init)
            # -> shardable across megacore TCs; pass/tile carry accumulators.
            dimension_semantics=("parallel", "arbitrary", "arbitrary"),
            vmem_limit_bytes=32 * 1024 * 1024,
        ),
    )(x1, x2)
    return jnp.mean(out)


@functools.partial(jax.jit, static_argnames=("tile_p",))
def psnr(img1, img2, tile_p=None):
    """PSNR matching the PyTorch PSNR module. img1/img2: (B,C,H,W) or (B,C,D,H,W)."""
    if img1.ndim == 5:
        B, C, D, H, W = img1.shape
        # One XLA transpose replaces D strided slice copies + 2*D kernel launches.
        x1 = jnp.transpose(img1, (2, 0, 1, 3, 4)).reshape(D, B, C * H * W)
        x2 = jnp.transpose(img2, (2, 0, 1, 3, 4)).reshape(D, B, C * H * W)
    else:
        B, C, H, W = img1.shape
        x1 = img1.reshape(1, B, C * H * W)
        x2 = img2.reshape(1, B, C * H * W)
    return _psnr_slabs(x1, x2, tile_p=tile_p)


# ---------------------------------------------------------------------------
# Pure-JAX reference (for correctness check only)
# ---------------------------------------------------------------------------
def _ref_psnr_4d(a, b):
    a = (a - a.min()) / (a.max() - a.min() + 1e-8)
    b = (b - b.min()) / (b.max() - b.min() + 1e-8)
    mse = jnp.mean((a - b) ** 2, axis=(1, 2, 3))
    return jnp.mean(10.0 * jnp.log10(1.0 / (mse + 1e-8)))


def _ref_psnr(a, b):
    if a.ndim == 5:
        D = a.shape[2]
        return sum(_ref_psnr_4d(a[:, :, d], b[:, :, d]) for d in range(D)) / D
    return _ref_psnr_4d(a, b)


if __name__ == "__main__":
    key = jax.random.PRNGKey(0)
    k1, k2 = jax.random.split(key)

    # 4-D path: batch=2, channels=4, spatial=16x16
    img1 = jax.random.uniform(k1, (2, 4, 16, 16), dtype=jnp.float32)
    img2 = img1 + 0.05 * jax.random.normal(k2, (2, 4, 16, 16), dtype=jnp.float32)
    out = jax.block_until_ready(psnr(img1, img2))
    ref = _ref_psnr(img1, img2)
    assert jnp.allclose(out, ref, rtol=1e-4, atol=1e-4), (out, ref)

    # 5-D path (B, C, D, H, W): D folded into the (parallel) grid axis.
    vol1 = jax.random.uniform(k1, (2, 4, 3, 16, 16), dtype=jnp.float32)
    vol2 = vol1 + 0.05 * jax.random.normal(k2, (2, 4, 3, 16, 16), dtype=jnp.float32)
    out5 = jax.block_until_ready(psnr(vol1, vol2))
    ref5 = _ref_psnr(vol1, vol2)
    assert jnp.allclose(out5, ref5, rtol=1e-4, atol=1e-4), (out5, ref5)

    # Exercise the tiled + masked streaming path at small scale
    # (P = 3*10*36 = 1080, forced 256-wide tiles -> 5 tiles, ragged last tile).
    img3 = jax.random.uniform(k1, (2, 3, 10, 36), dtype=jnp.float32)
    img4 = img3 + 0.05 * jax.random.normal(k2, (2, 3, 10, 36), dtype=jnp.float32)
    out_t = jax.block_until_ready(psnr(img3, img4, tile_p=256))
    ref_t = _ref_psnr(img3, img4)
    assert jnp.allclose(out_t, ref_t, rtol=1e-4, atol=1e-4), (out_t, ref_t)

    print("KERNEL_OK")
</pallas_src>

<mosaic_0001>
module attributes {stable_mosaic.version = 11 : i64} {
  func.func @_psnr_kernel(%arg0: i32, %arg1: i32, %arg2: i32, %arg3: memref<1x2x1024xf32, #tpu.memory_space<vmem>>, %arg4: memref<1x2x1024xf32, #tpu.memory_space<vmem>>, %arg5: memref<1x1x1xf32, #tpu.memory_space<vmem>>, %arg6: memref<4xf32, #tpu.memory_space<smem>>, %arg7: memref<2x1xf32, #tpu.memory_space<vmem>>) attributes {dimension_semantics = [#tpu.dimension_semantics<parallel>, #tpu.dimension_semantics<arbitrary>, #tpu.dimension_semantics<arbitrary>], iteration_bounds = array<i64: 1, 2, 1>, scalar_prefetch = 0 : i64, scratch_operands = 2 : i64, tpu.core_type = #tpu.core_type<tc>, window_params = [{transform_indices = @transform_0, window_bounds = array<i64: 1, 2, 1024>}, {transform_indices = @transform_1, window_bounds = array<i64: 1, 2, 1024>}, {transform_indices = @transform_2, window_bounds = array<i64: 1, 1, 1>}]} {
    %c0 = arith.constant 0 : index
    %c0_0 = arith.constant 0 : index
    %c0_1 = arith.constant 0 : index
    %0 = vector.load %arg3[%c0, %c0_0, %c0_1] : memref<1x2x1024xf32, #tpu.memory_space<vmem>>, vector<1x2x1024xf32>
    %1 = vector.shape_cast %0 : vector<1x2x1024xf32> to vector<2x1024xf32>
    %c0_2 = arith.constant 0 : index
    %c0_3 = arith.constant 0 : index
    %c0_4 = arith.constant 0 : index
    %2 = vector.load %arg4[%c0_2, %c0_3, %c0_4] : memref<1x2x1024xf32, #tpu.memory_space<vmem>>, vector<1x2x1024xf32>
    %3 = vector.shape_cast %2 : vector<1x2x1024xf32> to vector<2x1024xf32>
    %c0_i32 = arith.constant 0 : i32
    %4 = arith.cmpi eq, %arg1, %c0_i32 : i32
    %5 = arith.extui %4 : i1 to i32
    %c0_i32_5 = arith.constant 0 : i32
    %6 = arith.cmpi ne, %5, %c0_i32_5 : i32
    scf.if %6 {
      %c0_i32_7 = arith.constant 0 : i32
      %10 = arith.cmpi eq, %arg2, %c0_i32_7 : i32
      %11 = arith.extui %10 : i1 to i32
      %c0_i32_8 = arith.constant 0 : i32
      %12 = arith.cmpi ne, %11, %c0_i32_8 : i32
      scf.if %12 {
        %cst_18 = arith.constant 0x7F800000 : f32
        %c0_19 = arith.constant 0 : index
        %41 = memref.load %arg6[%c0_19] : memref<4xf32, #tpu.memory_space<smem>>
        memref.store %cst_18, %arg6[%c0_19] : memref<4xf32, #tpu.memory_space<smem>>
        %cst_20 = arith.constant 0xFF800000 : f32
        %c1_21 = arith.constant 1 : index
        %42 = memref.load %arg6[%c1_21] : memref<4xf32, #tpu.memory_space<smem>>
        memref.store %cst_20, %arg6[%c1_21] : memref<4xf32, #tpu.memory_space<smem>>
        %cst_22 = arith.constant 0x7F800000 : f32
        %c2_23 = arith.constant 2 : index
        %43 = memref.load %arg6[%c2_23] : memref<4xf32, #tpu.memory_space<smem>>
        memref.store %cst_22, %arg6[%c2_23] : memref<4xf32, #tpu.memory_space<smem>>
        %cst_24 = arith.constant 0xFF800000 : f32
        %c3_25 = arith.constant 3 : index
        %44 = memref.load %arg6[%c3_25] : memref<4xf32, #tpu.memory_space<smem>>
        memref.store %cst_24, %arg6[%c3_25] : memref<4xf32, #tpu.memory_space<smem>>
      } else {
      }
      %c0_9 = arith.constant 0 : index
      %13 = memref.load %arg6[%c0_9] : memref<4xf32, #tpu.memory_space<smem>>
      %14 = vector.shape_cast %1 : vector<2x1024xf32> to vector<1x2x1024xf32>
      %cst_10 = arith.constant dense<0x7F800000> : vector<1xf32>
      %15 = vector.multi_reduction <minimumf>, %14, %cst_10 [1, 2] : vector<1x2x1024xf32> to vector<1xf32>
      %16 = vector.shape_cast %15 : vector<1xf32> to vector<1x1x1xf32>
      %17 = vector.extract %16[0, 0, 0] : f32 from vector<1x1x1xf32>
      %18 = arith.minimumf %13, %17 : f32
      %c0_11 = arith.constant 0 : index
      %19 = memref.load %arg6[%c0_11] : memref<4xf32, #tpu.memory_space<smem>>
      memref.store %18, %arg6[%c0_11] : memref<4xf32, #tpu.memory_space<smem>>
      %c1 = arith.constant 1 : index
      %20 = memref.load %arg6[%c1] : memref<4xf32, #tpu.memory_space<smem>>
      %21 = vector.shape_cast %1 : vector<2x1024xf32> to vector<1x2x1024xf32>
      %cst_12 = arith.constant dense<0xFF800000> : vector<1xf32>
      %22 = vector.multi_reduction <maximumf>, %21, %cst_12 [1, 2] : vector<1x2x1024xf32> to vector<1xf32>
      %23 = vector.shape_cast %22 : vector<1xf32> to vector<1x1x1xf32>
      %24 = vector.extract %23[0, 0, 0] : f32 from vector<1x1x1xf32>
      %25 = arith.maximumf %20, %24 : f32
      %c1_13 = arith.constant 1 : index
      %26 = memref.load %arg6[%c1_13] : memref<4xf32, #tpu.memory_space<smem>>
      memref.store %25, %arg6[%c1_13] : memref<4xf32, #tpu.memory_space<smem>>
      %c2 = arith.constant 2 : index
      %27 = memref.load %arg6[%c2] : memref<4xf32, #tpu.memory_space<smem>>
      %28 = vector.shape_cast %3 : vector<2x1024xf32> to vector<1x2x1024xf32>
      %cst_14 = arith.constant dense<0x7F800000> : vector<1xf32>
      %29 = vector.multi_reduction <minimumf>, %28, %cst_14 [1, 2] : vector<1x2x1024xf32> to vector<1xf32>
      %30 = vector.shape_cast %29 : vector<1xf32> to vector<1x1x1xf32>
      %31 = vector.extract %30[0, 0, 0] : f32 from vector<1x1x1xf32>
      %32 = arith.minimumf %27, %31 : f32
      %c2_15 = arith.constant 2 : index
      %33 = memref.load %arg6[%c2_15] : memref<4xf32, #tpu.memory_space<smem>>
      memref.store %32, %arg6[%c2_15] : memref<4xf32, #tpu.memory_space<smem>>
      %c3 = arith.constant 3 : index
      %34 = memref.load %arg6[%c3] : memref<4xf32, #tpu.memory_space<smem>>
      %35 = vector.shape_cast %3 : vector<2x1024xf32> to vector<1x2x1024xf32>
      %cst_16 = arith.constant dense<0xFF800000> : vector<1xf32>
      %36 = vector.multi_reduction <maximumf>, %35, %cst_16 [1, 2] : vector<1x2x1024xf32> to vector<1xf32>
      %37 = vector.shape_cast %36 : vector<1xf32> to vector<1x1x1xf32>
      %38 = vector.extract %37[0, 0, 0] : f32 from vector<1x1x1xf32>
      %39 = arith.maximumf %34, %38 : f32
      %c3_17 = arith.constant 3 : index
      %40 = memref.load %arg6[%c3_17] : memref<4xf32, #tpu.memory_space<smem>>
      memref.store %39, %arg6[%c3_17] : memref<4xf32, #tpu.memory_space<smem>>
    } else {
    }
    %c1_i32 = arith.constant 1 : i32
    %7 = arith.cmpi eq, %arg1, %c1_i32 : i32
    %8 = arith.extui %7 : i1 to i32
    %cst = arith.constant 9.99999993E-9 : f32
    %c0_i32_6 = arith.constant 0 : i32
    %9 = arith.cmpi ne, %8, %c0_i32_6 : i32
    scf.if %9 {
      %c0_i32_7 = arith.constant 0 : i32
      %10 = arith.cmpi eq, %arg2, %c0_i32_7 : i32
      %11 = arith.extui %10 : i1 to i32
      %c0_i32_8 = arith.constant 0 : i32
      %12 = arith.cmpi ne, %11, %c0_i32_8 : i32
      scf.if %12 {
        %cst_19 = arith.constant 0.000000e+00 : f32
        %41 = vector.broadcast %cst_19 : f32 to vector<2x1xf32>
        %c0_20 = arith.constant 0 : index
        %c0_21 = arith.constant 0 : index
        %42 = vector.load %arg7[%c0_20, %c0_21] : memref<2x1xf32, #tpu.memory_space<vmem>>, vector<2x1xf32>
        tpu.vector_store %arg7[%c0_20, %c0_21], %41 {strides = array<i32>} : memref<2x1xf32, #tpu.memory_space<vmem>>, vector<2x1xf32>,
      } else {
      }
      %c0_9 = arith.constant 0 : index
      %13 = memref.load %arg6[%c0_9] : memref<4xf32, #tpu.memory_space<smem>>
      %c1 = arith.constant 1 : index
      %14 = memref.load %arg6[%c1] : memref<4xf32, #tpu.memory_space<smem>>
      %c2 = arith.constant 2 : index
      %15 = memref.load %arg6[%c2] : memref<4xf32, #tpu.memory_space<smem>>
      %c3 = arith.constant 3 : index
      %16 = memref.load %arg6[%c3] : memref<4xf32, #tpu.memory_space<smem>>
      %17 = arith.subf %14, %13 : f32
      %18 = arith.addf %17, %cst : f32
      %cst_10 = arith.constant 1.000000e+00 : f32
      %19 = arith.divf %cst_10, %18 : f32
      %20 = arith.subf %16, %15 : f32
      %21 = arith.addf %20, %cst : f32
      %cst_11 = arith.constant 1.000000e+00 : f32
      %22 = arith.divf %cst_11, %21 : f32
      %23 = vector.broadcast %13 : f32 to vector<2x1024xf32>
      %24 = arith.subf %1, %23 : vector<2x1024xf32>
      %25 = vector.broadcast %19 : f32 to vector<2x1024xf32>
      %26 = arith.mulf %24, %25 : vector<2x1024xf32>
      %27 = vector.broadcast %15 : f32 to vector<2x1024xf32>
      %28 = arith.subf %3, %27 : vector<2x1024xf32>
      %29 = vector.broadcast %22 : f32 to vector<2x1024xf32>
      %30 = arith.mulf %28, %29 : vector<2x1024xf32>
      %31 = arith.subf %26, %30 : vector<2x1024xf32>
      %c0_12 = arith.constant 0 : index
      %c0_13 = arith.constant 0 : index
      %32 = vector.load %arg7[%c0_12, %c0_13] : memref<2x1xf32, #tpu.memory_space<vmem>>, vector<2x1xf32>
      %33 = arith.mulf %31, %31 : vector<2x1024xf32>
      %cst_14 = arith.constant dense<0.000000e+00> : vector<2xf32>
      %34 = vector.multi_reduction <add>, %33, %cst_14 [1] : vector<2x1024xf32> to vector<2xf32>
      %35 = vector.shape_cast %34 : vector<2xf32> to vector<2x1xf32>
      %36 = arith.addf %32, %35 : vector<2x1xf32>
      %c0_15 = arith.constant 0 : index
      %c0_16 = arith.constant 0 : index
      %37 = vector.load %arg7[%c0_15, %c0_16] : memref<2x1xf32, #tpu.memory_space<vmem>>, vector<2x1xf32>
      tpu.vector_store %arg7[%c0_15, %c0_16], %36 {strides = array<i32>} : memref<2x1xf32, #tpu.memory_space<vmem>>, vector<2x1xf32>,
      %c0_i32_17 = arith.constant 0 : i32
      %38 = arith.cmpi eq, %arg2, %c0_i32_17 : i32
      %39 = arith.extui %38 : i1 to i32
      %c0_i32_18 = arith.constant 0 : i32
      %40 = arith.cmpi ne, %39, %c0_i32_18 : i32
      scf.if %40 {
        %c0_19 = arith.constant 0 : index
        %c0_20 = arith.constant 0 : index
        %41 = vector.load %arg7[%c0_19, %c0_20] : memref<2x1xf32, #tpu.memory_space<vmem>>, vector<2x1xf32>
        %cst_21 = arith.constant 9.765625E-4 : f32
        %42 = vector.broadcast %cst_21 : f32 to vector<2x1xf32>
        %43 = arith.mulf %41, %42 : vector<2x1xf32>
        %44 = vector.broadcast %cst : f32 to vector<2x1xf32>
        %45 = arith.addf %43, %44 : vector<2x1xf32>
        %46 = math.log %45 : vector<2x1xf32>
        %cst_22 = arith.constant 0.434294492 : f32
        %47 = vector.broadcast %cst_22 : f32 to vector<2x1xf32>
        %48 = arith.mulf %46, %47 : vector<2x1xf32>
        %cst_23 = arith.constant -1.000000e+01 : f32
        %49 = vector.broadcast %cst_23 : f32 to vector<2x1xf32>
        %50 = arith.mulf %49, %48 : vector<2x1xf32>
        %cst_24 = arith.constant dense<0.000000e+00> : vector<1xf32>
        %51 = vector.multi_reduction <add>, %50, %cst_24 [0] : vector<2x1xf32> to vector<1xf32>
        %52 = vector.shape_cast %51 : vector<1xf32> to vector<1x1xf32>
        %cst_25 = arith.constant 5.000000e-01 : f32
        %53 = vector.broadcast %cst_25 : f32 to vector<1x1xf32>
        %54 = arith.mulf %52, %53 : vector<1x1xf32>
        %c0_26 = arith.constant 0 : index
        %c0_27 = arith.constant 0 : index
        %c0_28 = arith.constant 0 : index
        %55 = vector.load %arg5[%c0_26, %c0_27, %c0_28] : memref<1x1x1xf32, #tpu.memory_space<vmem>>, vector<1x1x1xf32>
        %56 = vector.shape_cast %55 : vector<1x1x1xf32> to vector<1x1xf32>
        %57 = vector.shape_cast %54 : vector<1x1xf32> to vector<1x1x1xf32>
        tpu.vector_store %arg5[%c0_26, %c0_27, %c0_28], %57 {strides = array<i32>} : memref<1x1x1xf32, #tpu.memory_space<vmem>>, vector<1x1x1xf32>,
      } else {
      }
    } else {
    }
    return
  }
  func.func @transform_0(%arg0: i32, %arg1: i32, %arg2: i32) -> (i32, i32, i32) {
    %c0_i32 = arith.constant 0 : i32
    %c0_i32_0 = arith.constant 0 : i32
    return %arg0, %c0_i32, %arg2 : i32, i32, i32
  }
  func.func @transform_1(%arg0: i32, %arg1: i32, %arg2: i32) -> (i32, i32, i32) {
    %c0_i32 = arith.constant 0 : i32
    %c0_i32_0 = arith.constant 0 : i32
    return %arg0, %c0_i32, %arg2 : i32, i32, i32
  }
  func.func @transform_2(%arg0: i32, %arg1: i32, %arg2: i32) -> (i32, i32, i32) {
    %c0_i32 = arith.constant 0 : i32
    %c0_i32_0 = arith.constant 0 : i32
    %c0_i32_1 = arith.constant 0 : i32
    return %arg0, %c0_i32, %c0_i32_0 : i32, i32, i32
  }
}

</mosaic_0001>

<bundles_post_ra>
// kernel: psnr.1
= control target key start
LH: loop header
LB: loop body
LE: loop exit
PB: predicated region body
PF: predicated region fallthrough
CT: control target
= control target key end

     0   :  { %7 = vsyncpa [#allocation5], 0  ;;  %s787_s9 = smov 0   ;;  %s789_s10 = smov 0   ;;  %s915_s0 = inlined_call_operand.vmem [shape: f32[1,2,1024], index: 0, kind: input, shape index: {}]   ;;  %s916_s1 = inlined_call_operand.vmem [shape: f32[1,2,1024], index: 1, kind: input, shape index: {}]   ;;  %s917_s2 = inlined_call_operand.hbm [shape: f32[1,1,1], index: 2, kind: output, shape index: {}]  }
   0x1   :  { %s791_s11 = smov 0  }
   0x2 LB: > { %s645_s12 = sadd.s32 4294967295, %s766_s11   ;;  %s28_s13 = sadd.s32 1, %s762_s10  ;;  %s766_s11 = sphi %s791_s11, %s13_s11   ;;  %s762_s10 = sphi %s789_s10, %s920_s10   ;;  %s758_s9 = sphi %s787_s9, %s919_s9  }
   0x3   : > { %p30_p0 = scmp.ge.s32.totalorder %s28_s13, 2  ;;  %p649_p1 = scmp.ge.s32.totalorder %s766_s11, 1 }
   0x4   : > { %p156_p2 = scmp.lt.s32.totalorder %s766_s11, 3 }
   0x5   : > { %s922_s13 = smov (%p30_p0, %s28_s13), 0 }
   0x6   : > { %p157_p3 = pnand %p649_p1, %p156_p2 }
   0x7   : > { %p650_p4 = scmp.ne.s32.totalorder (!%p157_p3), %s758_s9, 0 }
   0x8   : > { %160 = sbr.rel (%p157_p3) target bundleno = 561 (0x231), region = 28 }
   0xd   : > { %v811_v0 = vld [vmem:[%s915_s0] sm:$0xff]  ;;  %v816_v1 = vld [vmem:[%s915_s0 + $0x8] sm:$0xff]  ;;  %213 = sbr.rel (%p650_p4) target bundleno = 252 (0xfc), region = 32 }
   0xe   : > { %v821_v2 = vld [vmem:[%s916_s1] sm:$0xff]  ;;  %v826_v3 = vld [vmem:[%s916_s1 + $0x8] sm:$0xff] }
  0x12   : > { %v233_v4 = vlaneseq  ;;  %v768_v5 = vmov 1983009808   ;;  %v330_v9 = vcombine.high %v821_v2, %v821_v2  ;;  %v347_v10 = vcombine.high %v826_v3, %v826_v3 }
  0x13   : > { %v231_v6 = vunpack.c.l.s4 %v768_v5  ;;  %v229_v11 = vcombine.high %v811_v0, %v811_v0  ;;  %v246_v12 = vcombine.high %v816_v1, %v816_v1  ;;  %vm271_vm0 = vcmask 1041408  }
  0x14   : > { %v234_v7 = vshrl.u32 %v233_v4, 7 }
  0x15   : > { %v232_v8 = vunpack.c.0.s8 %v231_v6 }
  0x17   : > { %v235_v13 = vsub.s32 %v232_v8, %v234_v7 }
  0x19   : > { %v337_v14 = vrot.slane %v821_v2, %v235_v13  ;;  %v344_v15 = vrot.slane %v330_v9, %v235_v13  ;;  %v354_v16 = vrot.slane %v826_v3, %v235_v13  ;;  %v361_v17 = vrot.slane %v347_v10, %v235_v13 }
  0x1a   : > { %v236_v18 = vrot.slane %v811_v0, %v235_v13  ;;  %v243_v19 = vrot.slane %v229_v11, %v235_v13  ;;  %v253_v20 = vrot.slane %v816_v1, %v235_v13  ;;  %v260_v21 = vrot.slane %v246_v12, %v235_v13 }
  0x1b   : > { %v345_v22 = vcombine.high %v337_v14, %v337_v14  ;;  %v346_v23 = vcombine.high %v344_v15, %v344_v15  ;;  %v362_v24 = vcombine.high %v354_v16, %v354_v16  ;;  %v363_v25 = vcombine.high %v361_v17, %v361_v17 }
  0x1c   : > { %v372_v26 = vsel %vm271_vm0, %v337_v14, inf  ;;  %v374_v27 = vsel %vm271_vm0, %v344_v15, inf  ;;  %v376_v28 = vsel %vm271_vm0, %v354_v16, inf  ;;  %v380_v29 = vsel %vm271_vm0, %v361_v17, inf }
  0x1d   : > { %v373_v30 = vsel %vm271_vm0, %v345_v22, inf  ;;  %v375_v31 = vsel %vm271_vm0, %v346_v23, inf  ;;  %v377_v32 = vmin.f32 %v372_v26, %v376_v28  ;;  %v378_v33 = vsel %vm271_vm0, %v362_v24, inf }
  0x1e   : > { %v379_v34 = vmin.f32 %v373_v30, %v378_v33  ;;  %v381_v35 = vmin.f32 %v374_v27, %v380_v29  ;;  %v382_v36 = vsel %vm271_vm0, %v363_v25, inf  ;;  %v244_v37 = vcombine.high %v236_v18, %v236_v18 }
  0x1f   : > { %v383_v38 = vmin.f32 %v375_v31, %v382_v36  ;;  %v245_v39 = vcombine.high %v243_v19, %v243_v19  ;;  %v261_v40 = vcombine.high %v253_v20, %v253_v20  ;;  %v262_v41 = vcombine.high %v260_v21, %v260_v21 }
  0x20   : > { %v384_v42 = vmin.f32 %v377_v32, %v379_v34  ;;  %v272_v43 = vsel %vm271_vm0, %v236_v18, inf  ;;  %v273_v44 = vsel %vm271_vm0, %v244_v37, inf  ;;  %v274_v45 = vsel %vm271_vm0, %v243_v19, inf }
  0x21   : > { %v385_v46 = vmin.f32 %v381_v35, %v383_v38  ;;  %v275_v47 = vsel %vm271_vm0, %v245_v39, inf  ;;  %v276_v48 = vsel %vm271_vm0, %v253_v20, inf  ;;  %v278_v49 = vsel %vm271_vm0, %v261_v40, inf }
  0x22   : > { %v277_v50 = vmin.f32 %v272_v43, %v276_v48  ;;  %v279_v51 = vmin.f32 %v273_v44, %v278_v49  ;;  %v280_v52 = vsel %vm271_vm0, %v260_v21, inf  ;;  %v282_v53 = vsel %vm271_vm0, %v262_v41, inf }
  0x23   : > { %v386_v54 = vmin.f32 %v384_v42, %v385_v46  ;;  %v281_v55 = vmin.f32 %v274_v45, %v280_v52  ;;  %v283_v56 = vmin.f32 %v275_v47, %v282_v53  ;;  %v400_v57 = vsel %vm271_vm0, %v337_v14, -inf }
  0x24   : > { %v284_v58 = vmin.f32 %v277_v50, %v279_v51  ;;  %v401_v59 = vsel %vm271_vm0, %v345_v22, -inf  ;;  %v402_v60 = vsel %vm271_vm0, %v344_v15, -inf  ;;  %v403_v61 = vsel %vm271_vm0, %v346_v23, -inf }
  0x25   : > { %387 = vmin.xlane.f32.xlu1 %v386_v54  ;;  %v285_v62 = vmin.f32 %v281_v55, %v283_v56  ;;  %v404_v63 = vsel %vm271_vm0, %v354_v16, -inf  ;;  %v406_v4 = vsel %vm271_vm0, %v362_v24, -inf  ;;  %v408_v5 = vsel %vm271_vm0, %v361_v17, -inf }
  0x26   : > { %v405_v6 = vmax.f32 %v400_v57, %v404_v63  ;;  %v407_v7 = vmax.f32 %v401_v59, %v406_v4  ;;  %v409_v8 = vmax.f32 %v402_v60, %v408_v5  ;;  %v410_v9 = vsel %vm271_vm0, %v363_v25, -inf }
  0x27   : > { %v286_v10 = vmin.f32 %v284_v58, %v285_v62  ;;  %v411_v11 = vmax.f32 %v403_v61, %v410_v9  ;;  %v300_v12 = vsel %vm271_vm0, %v236_v18, -inf  ;;  %v301_v13 = vsel %vm271_vm0, %v244_v37, -inf }
  0x28   : > { %v412_v14 = vmax.f32 %v405_v6, %v407_v7  ;;  %v302_v15 = vsel %vm271_vm0, %v243_v19, -inf  ;;  %v303_v16 = vsel %vm271_vm0, %v245_v39, -inf  ;;  %v304_v22 = vsel %vm271_vm0, %v253_v20, -inf }
  0x29   : > { %287 = vmin.xlane.f32.xlu0 %v286_v10  ;;  %v413_v17 = vmax.f32 %v409_v8, %v411_v11  ;;  %v305_v23 = vmax.f32 %v300_v12, %v304_v22  ;;  %v306_v24 = vsel %vm271_vm0, %v261_v40, -inf  ;;  %v308_v25 = vsel %vm271_vm0, %v260_v21, -inf }
  0x2a   : > { %v307_v26 = vmax.f32 %v301_v13, %v306_v24  ;;  %v309_v27 = vmax.f32 %v302_v15, %v308_v25  ;;  %v310_v18 = vsel %vm271_vm0, %v262_v41, -inf }
  0x2b   : > { %v414_v28 = vmax.f32 %v412_v14, %v413_v17  ;;  %v311_v29 = vmax.f32 %v303_v16, %v310_v18 }
  0x2c   : > { %v312_v30 = vmax.f32 %v305_v23, %v307_v26 }
  0x2d   : > { %415 = vmax.xlane.f32.xlu1 %v414_v28  ;;  %v313_v19 = vmax.f32 %v309_v27, %v311_v29 }
  0x2f   : > { %v314_v31 = vmax.f32 %v312_v30, %v313_v19 }
  0x31   : > { %315 = vmax.xlane.f32.xlu0 %v314_v31 }
  0xae   : > { %v388_v32 = vpop.xlane.xlu1 %387 }
  0xaf   : > { %v389_v20 = vrot.slane %v388_v32, 4 }
  0xb1   : > { %v390_v36 = vmin.f32 %v388_v32, %v389_v20 }
  0xb2   : > { %v288_v33 = vpop.xlane.xlu0 %287 }
  0xb3   : > { %v289_v34 = vrot.slane %v288_v33, 4  ;;  %v391_v42 = vrot.slane %v390_v36, 2 }
  0xb5   : > { %v290_v35 = vmin.f32 %v288_v33, %v289_v34  ;;  %v392_v49 = vmin.f32 %v390_v36, %v391_v42 }
  0xb6   : > { %v416_v37 = vpop.xlane.xlu1 %415 }
  0xb7   : > { %v291_v38 = vrot.slane %v290_v35, 2  ;;  %v417_v21 = vrot.slane %v416_v37, 4  ;;  %v393_v53 = vrot.slane %v392_v49, 1 }
  0xb9   : > { %v418_v39 = vmax.f32 %v416_v37, %v417_v21  ;;  %v292_v40 = vmin.f32 %v290_v35, %v291_v38  ;;  %v394_v57 = vmin.f32 %v392_v49, %v393_v53 }
  0xba   : > { %v316_v41 = vpop.xlane.xlu0 %315 }
  0xbb   : > { %v419_v43 = vrot.slane %v418_v39, 2  ;;  %v317_v44 = vrot.slane %v316_v41, 4  ;;  %v293_v45 = vrot.slane %v292_v40, 1 }
  0xbd   : > { %v420_v46 = vmax.f32 %v418_v39, %v419_v43  ;;  %v318_v47 = vmax.f32 %v316_v41, %v317_v44  ;;  %v294_v48 = vmin.f32 %v292_v40, %v293_v45 }
  0xbf   : > { %v319_v50 = vrot.slane %v318_v47, 2  ;;  %662 = vpush %v294_v48  ;;  %v421_v52 = vrot.slane %v420_v46, 1 }
  0xc1   : > { %v320_v51 = vmax.f32 %v318_v47, %v319_v50  ;;  %v422_v56 = vmax.f32 %v420_v46, %v421_v52 }
  0xc3   : > { %v321_v54 = vrot.slane %v320_v51, 1 }
  0xc5   : > { %v322_v55 = vmax.f32 %v320_v51, %v321_v54 }
  0xc7   : > { %664 = vpush %v322_v55 }
  0xc8   : > { %666 = vpush %v394_v57 }
  0xc9   : > { %668 = vpush %v422_v56 }
  0xf0   : > { %s663_s22 = spop %662 }
  0xf1   : > { %298 = sst [smem:[#allocation2]] %s663_s22 }
  0xf8   : > { %s665_s23 = spop %664 }
  0xf9   : > { %s667_s24 = spop %666  ;;  %326 = sst [smem:[#allocation2 + $0x1]] %s665_s23 }
  0xfa   : > { %398 = sst [smem:[#allocation2 + $0x2]] %s667_s24  ;;  %s669_s25 = spop %668 }
  0xfb   : > { %426 = sst [smem:[#allocation2 + $0x3]] %s669_s25 }
  0xfc PF: > { %p654_p5 = scmp.ne.s32.totalorder %s758_s9, 1 }
  0xfd   : > { %s437_s26 = sld [smem:[#allocation2]] (!%p654_p5) }
  0xfe   : > { %430 = sbr.rel (%p654_p5) target bundleno = 546 (0x222), region = 40  ;;  %s655_s27 = sld [smem:[#allocation2 + $0x1]] (!%p654_p5) }
  0xff   : > { %s656_s28 = sld [smem:[#allocation2 + $0x2]] (!%p654_p5) }
 0x100   : > { %s657_s29 = sld [smem:[#allocation2 + $0x3]] (!%p654_p5) }
 0x103   : > { %vm435_vm1 = vcmask 1024   ;;  %v769_v58 = vmov 0.0   ;;  %v451_v63 = vstv %s437_s26  ;;  %v770_v7 = vmov 1983009808  }
 0x104   : > { %436 = vst.msk [vmem:[#allocation3] sm:$0x3] %vm435_vm1, %v769_v58  ;;  %s441_s30 = ssub.f32 %s655_s27, %s437_s26  ;;  %v452_v5 = vsub.f32 %v811_v0, %v451_v63  ;;  %v453_v6 = vsub.f32 %v816_v1, %v451_v63  ;;  %v472_v8 = vunpack.c.l.s4 %v770_v7  ;;  %v474_v9 = vlaneseq }
 0x105   : > { %v457_v4 = vstv %s656_s28  ;;  %vm512_vm2 = vcmask 1041408   ;;  %vm551_vm3 = vcmask 0  }
 0x106   : > { %s442_s3 = sadd.f32 1e-08, %s441_s30  ;;  %v458_v11 = vsub.f32 %v821_v2, %v457_v4  ;;  %v459_v12 = vsub.f32 %v826_v3, %v457_v4  ;;  %v473_v15 = vunpack.c.0.s8 %v472_v8  ;;  %v475_v16 = vshrl.u32 %v474_v9, 7 }
 0x107   : > { %s446_s4 = ssub.f32 %s657_s29, %s656_s28 }
 0x108   : > { %v443_v59 = vstv %s442_s3  ;;  %v476_v1 = vsub.s32 %v473_v15, %v475_v16 }
 0x109   : > { %710 = vrcp.f32 %v443_v59  ;;  %s447_s5 = sadd.f32 1e-08, %s446_s4 }
 0x10b   : > { %v448_v60 = vstv %s447_s5  ;;  %v465_v46 = vld [vmem:[#allocation3] sm:$0x3] }
 0x10c   : > { %712 = vrcp.f32 %v448_v60 }
 0x116   : > { %v711_v61 = vpop.eup %710 }
 0x117   : > { %670 = vpush %v711_v61 }
 0x119   : > { %v713_v62 = vpop.eup %712 }
 0x11a   : > { %672 = vpush %v713_v62 }
 0x148   : > { %s671_s6 = spop %670 }
 0x149   : > { %v454_v10 = vstv %s671_s6 }
 0x14a   : > { %v455_v13 = vmul.f32 %v454_v10, %v452_v5  ;;  %v456_v14 = vmul.f32 %v454_v10, %v453_v6 }
 0x14b   : > { %s673_s7 = spop %672 }
 0x14c   : > { %v460_v22 = vstv %s673_s7 }
 0x14d   : > { %v461_v17 = vmul.f32 %v460_v22, %v458_v11  ;;  %v462_v23 = vmul.f32 %v460_v22, %v459_v12 }
 0x14f   : > { %v463_v0 = vsub.f32 %v455_v13, %v461_v17  ;;  %v464_v24 = vsub.f32 %v456_v14, %v462_v23 }
 0x151   : > { %v466_v25 = vmul.f32 %v463_v0, %v463_v0  ;;  %v467_v26 = vmul.f32 %v464_v24, %v464_v24 }
 0x153   : > { %v470_v27 = vcombine.high %v466_v25, %v466_v25  ;;  %v477_v18 = vrot.slane %v466_v25, %v476_v1  ;;  %v487_v29 = vcombine.high %v467_v26, %v467_v26  ;;  %v494_v30 = vrot.slane %v467_v26, %v476_v1 }
 0x155   : > { %v484_v28 = vrot.slane %v470_v27, %v476_v1  ;;  %v485_v2 = vcombine.high %v477_v18, %v477_v18  ;;  %v513_v19 = vsel %vm512_vm2, %v477_v18, 0.0  ;;  %v501_v34 = vrot.slane %v487_v29, %v476_v1 }
 0x156   : > { %v502_v35 = vcombine.high %v494_v30, %v494_v30  ;;  %v520_v38 = vsel %vm512_vm2, %v494_v30, 0.0 }
 0x157   : > { %v486_v3 = vcombine.high %v484_v28, %v484_v28  ;;  %v514_v31 = vsel %vm512_vm2, %v485_v2, 0.0  ;;  %v516_v20 = vsel %vm512_vm2, %v484_v28, 0.0  ;;  %v503_v39 = vcombine.high %v501_v34, %v501_v34 }
 0x158   : > { %v515_v32 = vadd.f32 %v514_v31, %v513_v19  ;;  %v522_v40 = vsel %vm512_vm2, %v502_v35, 0.0  ;;  %v524_v41 = vsel %vm512_vm2, %v501_v34, 0.0 }
 0x159   : > { %v518_v36 = vsel %vm512_vm2, %v486_v3, 0.0  ;;  %v526_v44 = vsel %vm512_vm2, %v503_v39, 0.0 }
 0x15a   : > { %v517_v33 = vadd.f32 %v516_v20, %v515_v32 }
 0x15c   : > { %v519_v37 = vadd.f32 %v518_v36, %v517_v33 }
 0x15e   : > { %v521_v21 = vadd.f32 %v520_v38, %v519_v37 }
 0x160   : > { %v523_v42 = vadd.f32 %v522_v40, %v521_v21 }
 0x162   : > { %v525_v43 = vadd.f32 %v524_v41, %v523_v42 }
 0x164   : > { %v527_v45 = vadd.f32 %v526_v44, %v525_v43 }
 0x166   : > { %528 = vadd.xlane.f32.xlu0 %v527_v45 }
 0x1ef   : > { %v529_v47 = vpop.xlane.xlu0 %528 }
 0x1f0   : > { %v530_v48 = vadd.f32 %v529_v47, %v465_v46 }
 0x1f2   : > { %532 = vst.msk [vmem:[#allocation3] sm:$0x3] %vm435_vm1, %v530_v48 }
 0x1f9   : > { %v536_v49 = vld [vmem:[#allocation3] sm:$0x3] }
 0x1fa   : > { %v537_v50 = vmul.f32 0.0009765625, %v536_v49 }
 0x1fc   : > { %v538_v51 = vadd.f32 1e-08, %v537_v50 }
 0x1fe   : > { %714 = vlog2.f32 %v538_v51 }
 0x20b   : > { %v715_v52 = vpop.eup %714 }
 0x20c   : > { %v540_v53 = vmul.f32 0.6931472, %v715_v52 }
 0x20e   : > { %v541_v54 = vmul.f32 0.4342945, %v540_v53 }
 0x210   : > { %v542_v55 = vmul.f32 -10.0, %v541_v54 }
 0x212   : > { %v543_v56 = vsel %vm435_vm1, %v542_v55, 0.0 }
 0x213   : > { %v544_v57 = vrot.slane %v543_v56, 4 }
 0x215   : > { %v545_v58 = vadd.f32 %v544_v57, %v543_v56 }
 0x217   : > { %v546_v59 = vrot.slane %v545_v58, 2 }
 0x219   : > { %v547_v60 = vadd.f32 %v546_v59, %v545_v58 }
 0x21b   : > { %v548_v61 = vrot.slane %v547_v60, 1 }
 0x21d   : > { %v549_v62 = vadd.f32 %v548_v61, %v547_v60 }
 0x21f   : > { %v550_v63 = vmul.f32 0.5, %v549_v62 }
 0x221   : > { %552 = vst.msk [vmem:[#allocation4] sm:$0x1] %vm551_vm3, %v550_v63 }
 0x222 PF: > { %p891_p6 = scmp.eq.s32.totalorder %s645_s12, 1  ;;  %s771_s9 = smov [#allocation4]  }
 0x223   : > { %s562_s14 = sshll.u32 %s771_s9, 4  ;;  %s563_s14 = int_to_ptr.vmem [resolvable:$true] %s562_s14 }
 0x224   : > { %s716_s15 = scalar_lea.vmem %s563_s14, 16  ;;  %s722_s16 = scalar_lea.vmem %s563_s14, 32 }
 0x225   : > { %p717_p7 = scmp.ne.s32.totalorder %s563_s14, %s716_s15  ;;  %p723_p10 = scmp.lt.s32.totalorder %s563_s14, %s563_s14 }
 0x226   : > { %p724_p11 = scmp.lt.s32.totalorder %s722_s16, %s716_s15 }
 0x227   : > { %p718_p8 = pnand %p717_p7, %p891_p6 }
 0x228   : > { %p725_p12 = por %p724_p11, %p723_p10 }
 0x229   : > { %p719_p9 = pneg %p718_p8 }
 0x22b   : > { %p726_p13 = pnand %p725_p12, %p719_p9 }
 0x22d   : > { %729 = shalt.err (!%p726_p13)
}
 0x22e   : > { %675 = dma.vmem_to_hbm [thread:$0]  (%p891_p6), %s563_s14, 16, %s917_s2, [#allocation5]  }
 0x22f   : > { %753 = dma.done.wait (%p891_p6), [#allocation5], 16  }
 0x230   : > { %755 = vsyncadd (%p891_p6), [#allocation5], 4294967280 }
 0x231 PF: > { %s13_s11 = sadd.s32 1, %s766_s11   ;;  %s919_s9 = smov %s762_s10 }
 0x232   : > { %p10_p0 = scmp.ge.s32.totalorder %s13_s11, 4   ;;  %s920_s10 = smov %s922_s13 }
 0x234   :  { %12 = sbr.rel (!%p10_p0) target bundleno = 2 (0x2), region = 87 }
 0x239   :  { %575 = vsyncpa [#allocation5], 1 }
 0x23a   :  { %577 = vsyncpa [#allocation5 + $0x1], 1 }

</bundles_post_ra>
